<compile_context>
chip_gen: v7x
topology: tpu7x:2x2x1
jax: 0.10.0
libtpu: 0.0.40
codegen_flags: <defaults>
</compile_context>

<pallas_src>
import math

import jax
import jax.numpy as jnp
from jax.experimental import pallas as pl
from jax.experimental.pallas import tpu as pltpu


def _cmvn_kernel_norm_var(x_ref, mean_ref, istd_ref, o_ref):
    # x_ref: (tile_r, C); mean_ref / istd_ref: (1, C) -> broadcast over rows.
    x = x_ref[...].astype(jnp.float32)
    o_ref[...] = ((x - mean_ref[...]) * istd_ref[...]).astype(o_ref.dtype)


def _cmvn_kernel_no_var(x_ref, mean_ref, o_ref):
    x = x_ref[...].astype(jnp.float32)
    o_ref[...] = (x - mean_ref[...]).astype(o_ref.dtype)


def global_cmvn(x, mean, istd=None, norm_var=True):
    """Pallas implementation of GlobalCMVN.forward.

    Args:
        x:    (B, T, D) features
        mean: (D,) mean stats
        istd: (D,) inverse std stats (required iff norm_var=True)
        norm_var: if True, also multiply by istd
    Returns:
        (B, T, D) normalized features, same dtype as x
    """
    B, T, D = x.shape
    rows_total = B * T

    # Fold k time steps per row so the lane dim (k * D) is a multiple of 128.
    # The (B,T,D) -> (R,C) reshape is contiguous row-major, so it is free.
    k = 128 // math.gcd(D, 128)
    fold = k if (k > 1 and rows_total % k == 0) else 1
    # TODO(synk): if rows_total % k != 0 we fall back to unfolded (possibly
    # masked) stores rather than padding rows with an extra HBM copy.
    R = rows_total // fold
    C = D * fold

    x2 = x.reshape(R, C)

    mean_f32 = jnp.asarray(mean, jnp.float32).reshape(1, D)
    mean2d = jnp.tile(mean_f32, (1, fold)) if fold > 1 else mean_f32
    if norm_var:
        if istd is None:
            raise ValueError("istd must be provided when norm_var=True")
        istd_f32 = jnp.asarray(istd, jnp.float32).reshape(1, D)
        istd2d = jnp.tile(istd_f32, (1, fold)) if fold > 1 else istd_f32

    # Fixed ~2 MiB row tiles (multiple of 8 rows).  With double-buffered input
    # and output blocks (<= ~10 MiB total incl. f32 temps) this fits inside
    # the scoped-VMEM default on every generation, yet is big enough (>= 512
    # lane-rows equivalent) to sit at ~85%+ of the HBM roofline.
    itemsize = max(jnp.dtype(x.dtype).itemsize, 4)
    target_bytes = 2 * 1024 * 1024
    tile_r = max(8, (target_bytes // (C * itemsize)) // 8 * 8)
    if tile_r >= R:
        tile_r = R  # full extent: always a legal block shape

    grid = (pl.cdiv(R, tile_r),)

    stats_spec = pl.BlockSpec((1, C), lambda i: (0, 0))  # resident, constant map
    x_spec = pl.BlockSpec((tile_r, C), lambda i: (i, 0))
    out_spec = pl.BlockSpec((tile_r, C), lambda i: (i, 0))

    if norm_var:
        kernel = _cmvn_kernel_norm_var
        in_specs = [x_spec, stats_spec, stats_spec]
        args = (x2, mean2d, istd2d)
        n_stats = 2
    else:
        kernel = _cmvn_kernel_no_var
        in_specs = [x_spec, stats_spec]
        args = (x2, mean2d)
        n_stats = 1

    x_bytes = R * C * jnp.dtype(x.dtype).itemsize
    cost = pl.CostEstimate(
        flops=R * C * (2 if norm_var else 1),
        transcendentals=0,
        bytes_accessed=2 * x_bytes + n_stats * C * 4,
    )

    out2 = pl.pallas_call(
        kernel,
        out_shape=jax.ShapeDtypeStruct((R, C), x.dtype),
        grid_spec=pltpu.PrefetchScalarGridSpec(
            num_scalar_prefetch=0,
            grid=grid,
            in_specs=in_specs,
            out_specs=out_spec,
        ),
        compiler_params=pltpu.CompilerParams(
            dimension_semantics=("parallel",),
            vmem_limit_bytes=32 * 1024 * 1024,
        ),
        cost_estimate=cost,
    )(*args)

    return out2.reshape(B, T, D)


if __name__ == "__main__":
    key = jax.random.PRNGKey(0)
    kx, km, ks = jax.random.split(key, 3)

    B, T, D = 2, 8, 32  # (batch, max_len, feat_dim)
    x = jax.random.normal(kx, (B, T, D), dtype=jnp.float32)
    # Deterministic "stats": mean from a normal draw, istd = 1/std with std > 0.
    mean = jax.random.normal(km, (D,), dtype=jnp.float32)
    std = jax.nn.softplus(jax.random.normal(ks, (D,), dtype=jnp.float32)) + 0.1
    istd = 1.0 / std

    out = jax.block_until_ready(global_cmvn(x, mean, istd, norm_var=True))

    # Reference check (plain JAX)
    ref = (x - mean.reshape(1, 1, D)) * istd.reshape(1, 1, D)
    assert out.shape == (B, T, D)
    assert out.dtype == x.dtype
    assert jnp.allclose(out, ref, atol=1e-6, rtol=1e-6)

    # Also exercise norm_var=False path (no istd argument at all).
    out2 = jax.block_until_ready(global_cmvn(x, mean, norm_var=False))
    ref2 = x - mean.reshape(1, 1, D)
    assert jnp.allclose(out2, ref2, atol=1e-6, rtol=1e-6)

    # Non-128-aligned feat_dim with time-folding (D=80 -> fold=8, C=640).
    B2, T2, D2 = 2, 16, 80
    x3 = jax.random.normal(kx, (B2, T2, D2), dtype=jnp.float32)
    mean3 = jax.random.normal(km, (D2,), dtype=jnp.float32)
    istd3 = 1.0 / (jax.nn.softplus(jax.random.normal(ks, (D2,), jnp.float32)) + 0.1)
    out3 = jax.block_until_ready(global_cmvn(x3, mean3, istd3, norm_var=True))
    ref3 = (x3 - mean3.reshape(1, 1, D2)) * istd3.reshape(1, 1, D2)
    assert jnp.allclose(out3, ref3, atol=1e-6, rtol=1e-6)

    print("KERNEL_OK")
</pallas_src>

<mosaic_0001>
module attributes {stable_mosaic.version = 11 : i64} {
  func.func @_cmvn_kernel_norm_var(%arg0: i32, %arg1: memref<4x128xf32, #tpu.memory_space<vmem>>, %arg2: memref<1x128xf32, #tpu.memory_space<vmem>>, %arg3: memref<1x128xf32, #tpu.memory_space<vmem>>, %arg4: memref<4x128xf32, #tpu.memory_space<vmem>>) attributes {dimension_semantics = [#tpu.dimension_semantics<parallel>], iteration_bounds = array<i64: 1>, scalar_prefetch = 0 : i64, scratch_operands = 0 : i64, tpu.core_type = #tpu.core_type<tc>, window_params = [{transform_indices = @transform_0, window_bounds = array<i64: 4, 128>}, {pipeline_mode = #tpu.pipeline_mode<synchronous>, transform_indices = @transform_1, window_bounds = array<i64: 1, 128>}, {pipeline_mode = #tpu.pipeline_mode<synchronous>, transform_indices = @transform_2, window_bounds = array<i64: 1, 128>}, {transform_indices = @transform_3, window_bounds = array<i64: 4, 128>}]} {
    %c0 = arith.constant 0 : index
    %c0_0 = arith.constant 0 : index
    %0 = vector.load %arg1[%c0, %c0_0] : memref<4x128xf32, #tpu.memory_space<vmem>>, vector<4x128xf32>
    %c0_1 = arith.constant 0 : index
    %c0_2 = arith.constant 0 : index
    %1 = vector.load %arg2[%c0_1, %c0_2] : memref<1x128xf32, #tpu.memory_space<vmem>>, vector<1x128xf32>
    %2 = vector.broadcast %1 : vector<1x128xf32> to vector<4x128xf32>
    %3 = arith.subf %0, %2 : vector<4x128xf32>
    %c0_3 = arith.constant 0 : index
    %c0_4 = arith.constant 0 : index
    %4 = vector.load %arg3[%c0_3, %c0_4] : memref<1x128xf32, #tpu.memory_space<vmem>>, vector<1x128xf32>
    %5 = vector.broadcast %4 : vector<1x128xf32> to vector<4x128xf32>
    %6 = arith.mulf %3, %5 : vector<4x128xf32>
    %c0_5 = arith.constant 0 : index
    %c0_6 = arith.constant 0 : index
    %7 = vector.load %arg4[%c0_5, %c0_6] : memref<4x128xf32, #tpu.memory_space<vmem>>, vector<4x128xf32>
    tpu.vector_store %arg4[%c0_5, %c0_6], %6 {strides = array<i32>} : memref<4x128xf32, #tpu.memory_space<vmem>>, vector<4x128xf32>,
    return
  }
  func.func @transform_0(%arg0: i32) -> (i32, i32) {
    %c0_i32 = arith.constant 0 : i32
    %c0_i32_0 = arith.constant 0 : i32
    return %arg0, %c0_i32 : i32, i32
  }
  func.func @transform_1(%arg0: i32) -> (i32, i32) {
    %c0_i32 = arith.constant 0 : i32
    %c0_i32_0 = arith.constant 0 : i32
    %c0_i32_1 = arith.constant 0 : i32
    return %c0_i32, %c0_i32_0 : i32, i32
  }
  func.func @transform_2(%arg0: i32) -> (i32, i32) {
    %c0_i32 = arith.constant 0 : i32
    %c0_i32_0 = arith.constant 0 : i32
    %c0_i32_1 = arith.constant 0 : i32
    return %c0_i32, %c0_i32_0 : i32, i32
  }
  func.func @transform_3(%arg0: i32) -> (i32, i32) {
    %c0_i32 = arith.constant 0 : i32
    %c0_i32_0 = arith.constant 0 : i32
    return %arg0, %c0_i32 : i32, i32
  }
}

</mosaic_0001>

<bundles_post_ra>
// kernel: tpu_custom_call.1
= control target key start
LH: loop header
LB: loop body
LE: loop exit
PB: predicated region body
PF: predicated region fallthrough
CT: control target
= control target key end

     0   :  { %8 = vsyncpa [#allocation3], 0  ;;  %s164_s0 = inlined_call_operand.hbm [shape: f32[4,128], index: 0, kind: input, shape index: {}]   ;;  %s165_s1 = inlined_call_operand.vmem [shape: f32[1,128], index: 1, kind: input, shape index: {}]   ;;  %s166_s2 = inlined_call_operand.vmem [shape: f32[1,128], index: 2, kind: input, shape index: {}]   ;;  %s167_s3 = inlined_call_operand.hbm [shape: f32[4,128], index: 3, kind: output, shape index: {}]  }
   0x1   :  { %9 = vsyncpa [#allocation4], 0  ;;  %s112_s12 = smov [#allocation2]   ;;  %s64_s16 = scalar_lea.hbm %s164_s0, 64 }
   0x2   :  { %s16_s13 = sshll.u32 %s112_s12, 4  ;;  %p65_p0 = scmp.ne.s32.totalorder %s164_s0, %s64_s16  ;;  %s17_s13 = int_to_ptr.vmem [resolvable:$true] %s16_s13 }
   0x3   :  { %p68_p1 = scmp.lt.u32.totalorder %s64_s16, %s164_s0 }
   0x5   :  { %p70_p2 = pnand %p68_p1, %p65_p0 }
   0x7   :  { %73 = shalt.err (!%p70_p2)
}
   0x8   :  { %s74_s21 = scalar_lea.vmem %s17_s13, 64  ;;  %p79_p4 = scmp.lt.s32.totalorder %s17_s13, %s17_s13 }
   0x9   :  { %p75_p3 = scmp.ne.s32.totalorder %s17_s13, %s74_s21  ;;  %p80_p5 = scmp.lt.s32.totalorder %s74_s21, %s74_s21 }
   0xb   :  { %p81_p6 = por %p80_p5, %p79_p4 }
   0xd   :  { %p82_p7 = pnand %p81_p6, %p75_p3 }
   0xf   :  { %85 = shalt.err (!%p82_p7)
}
  0x10   :  { %19 = dma.hbm_to_vmem [thread:$0]  %s164_s0, 64, %s17_s13, [#allocation3]  }
  0x11   :  { %108 = dma.done.wait [#allocation3], 64  }
  0x12   :  { %109 = vsyncadd [#allocation3], 4294967232  ;;  %s113_s24 = smov [#allocation5]   ;;  %v27_v0 = vld [vmem:[#allocation2] sm:$0xf] }
  0x13   :  { %s51_s25 = sshll.u32 %s113_s24, 4  ;;  %v60_v1 = vld [vmem:[%s165_s1] ss:$0 sm:$0xff]  ;;  %s52_s25 = int_to_ptr.vmem [resolvable:$true] %s51_s25 }
  0x14   :  { %v61_v2 = vld [vmem:[%s166_s2] ss:$0 sm:$0xff]  ;;  %v35_v3 = vsub.f32 %v27_v0, %v60_v1  ;;  %s86_s30 = scalar_lea.vmem %s52_s25, 64  ;;  %p91_p9 = scmp.lt.s32.totalorder %s52_s25, %s52_s25 }
  0x15   :  { %p87_p8 = scmp.ne.s32.totalorder %s52_s25, %s86_s30  ;;  %p92_p10 = scmp.lt.s32.totalorder %s86_s30, %s86_s30 }
  0x16   :  { %v43_v4 = vmul.f32 %v61_v2, %v35_v3 }
  0x17   :  { %p93_p11 = por %p92_p10, %p91_p9 }
  0x18   :  { %44 = vst [vmem:[#allocation5] sm:$0xf] %v43_v4 }
  0x19   :  { %p94_p12 = pnand %p93_p11, %p87_p8 }
  0x1b   :  { %97 = shalt.err (!%p94_p12)
}
  0x1c   :  { %s98_s5 = scalar_lea.hbm %s167_s3, 64 }
  0x1d   :  { %p99_p13 = scmp.ne.s32.totalorder %s167_s3, %s98_s5  ;;  %p102_p0 = scmp.lt.u32.totalorder %s98_s5, %s167_s3 }
  0x1f   :  { %p104_p1 = pnand %p102_p0, %p99_p13 }
  0x21   :  { %107 = shalt.err (!%p104_p1)
}
  0x22   :  { %54 = dma.vmem_to_hbm [thread:$0]  %s52_s25, 64, %s167_s3, [#allocation4]  }
  0x23   :  { %110 = dma.done.wait [#allocation4], 64  }
  0x24   :  { %111 = vsyncadd [#allocation4], 4294967232 }
  0x25   :  { %58 = vsyncpa [#allocation3], 1 }
  0x26   :  { %59 = vsyncpa [#allocation4], 1 }

</bundles_post_ra>
